<compile_context>
chip_gen: v7x
topology: tpu7x:2x2x1
jax: 0.10.0
libtpu: 0.0.40
codegen_flags: <defaults>
</compile_context>

<pallas_src>
import functools

import jax
import jax.numpy as jnp
from jax.experimental import pallas as pl
from jax.experimental.pallas import tpu as pltpu


def _round_up(n: int, m: int) -> int:
    return ((n + m - 1) // m) * m


def _ffn_kernel(x_ref, g_ref, b_ref, w1o_ref, b1o_ref, w1g_ref, b1g_ref,
                w2_ref, b2_ref, o_ref, xn_ref, acc_ref, *, eps: float):
    k = pl.program_id(1)

    # ---- LayerNorm once per row block (k == 0), stashed in f32 scratch ----
    @pl.when(k == 0)
    def _():
        x = x_ref[...].astype(jnp.float32)                      # (tm, dim)
        mean = jnp.mean(x, axis=-1, keepdims=True)
        var = jnp.mean((x - mean) * (x - mean), axis=-1, keepdims=True)
        xn = (x - mean) * jax.lax.rsqrt(var + eps)
        xn = xn * g_ref[...].astype(jnp.float32) + b_ref[...].astype(jnp.float32)
        xn_ref[...] = xn
        acc_ref[...] = jnp.zeros_like(acc_ref)

    # ---- Linear(dim -> inner_tile) for out & gate halves (MXU, native dtype) ----
    xn = xn_ref[...].astype(w1o_ref.dtype)                      # (tm, dim)
    h_out = jnp.dot(xn, w1o_ref[...], preferred_element_type=jnp.float32)
    h_out = h_out + b1o_ref[...].astype(jnp.float32)            # (tm, tk)
    h_gate = jnp.dot(xn, w1g_ref[...], preferred_element_type=jnp.float32)
    h_gate = h_gate + b1g_ref[...].astype(jnp.float32)          # (tm, tk)

    # ---- GLU: out * sigmoid(gate)  (f32 elementwise; dropout = identity) ----
    glu = h_out * jax.nn.sigmoid(h_gate)                        # (tm, tk)

    # ---- Partial Linear(inner_tile -> dim) accumulated in f32 ----
    acc_ref[...] += jnp.dot(glu.astype(w2_ref.dtype), w2_ref[...],
                            preferred_element_type=jnp.float32)  # (tm, dim)

    # ---- Finalize: add output bias, cast, store (single lane-dense write) ----
    @pl.when(k == pl.num_programs(1) - 1)
    def _():
        o_ref[...] = (acc_ref[...]
                      + b2_ref[...].astype(jnp.float32)).astype(o_ref.dtype)


def conformer_feed_forward(x, gamma, beta, w1, b1, w2, b2, *,
                           eps: float = 1e-5,
                           block_rows: int = 256,
                           inner_block: int = 512):
    """x: (batch, seq, dim). w1: (dim, 2*inner), b1: (2*inner,),
    w2: (inner, dim), b2: (dim,)."""
    batch, seq, dim = x.shape
    two_inner = w1.shape[1]
    inner = two_inner // 2
    rows = batch * seq

    # ---- Split w1/b1 into out & gate halves (matches torch chunk(2, dim=-1)) ----
    w1_out = w1[:, :inner]
    w1_gate = w1[:, inner:]
    b1_out = b1[:inner].reshape(1, inner)
    b1_gate = b1[inner:].reshape(1, inner)
    gamma2d = gamma.reshape(1, dim)
    beta2d = beta.reshape(1, dim)
    b2_2d = b2.reshape(1, dim)

    # ---- Row tiling: large blocks, pad tail rows with zeros ----
    tm = min(block_rows, _round_up(rows, 8))
    rows_p = _round_up(rows, tm)
    x2d = x.reshape(rows, dim)
    if rows_p != rows:
        x2d = jnp.pad(x2d, ((0, rows_p - rows), (0, 0)))

    # ---- Inner-dim tiling: largest of {inner_block, 512, 256, 128} dividing
    #      inner, else the full inner dim ----
    tk = inner
    for cand in (inner_block, 512, 256, 128):
        if cand <= inner and inner % cand == 0:
            tk = cand
            break

    grid = (rows_p // tm, inner // tk)

    # ---- VMEM budget (double-buffered tiles + f32 scratch), with headroom ----
    abytes = jnp.dtype(x.dtype).itemsize
    wbytes = jnp.dtype(w1.dtype).itemsize
    est = 2 * (tm * dim * abytes            # x in
               + 2 * dim * tk * wbytes      # w1_out + w1_gate tiles
               + tk * dim * wbytes          # w2 tile
               + tm * dim * abytes)         # out
    est += 2 * tm * dim * 4                 # xn + acc scratch (f32)
    vmem_limit = min(max(int(est * 1.5) + (4 << 20), 32 << 20), 64 << 20)

    kernel = functools.partial(_ffn_kernel, eps=eps)

    out2d = pl.pallas_call(
        kernel,
        out_shape=jax.ShapeDtypeStruct((rows_p, dim), x.dtype),
        grid_spec=pltpu.PrefetchScalarGridSpec(
            num_scalar_prefetch=0,
            grid=grid,
            in_specs=[
                pl.BlockSpec((tm, dim), lambda i, k: (i, 0)),     # x rows
                pl.BlockSpec((1, dim), lambda i, k: (0, 0)),      # gamma
                pl.BlockSpec((1, dim), lambda i, k: (0, 0)),      # beta
                pl.BlockSpec((dim, tk), lambda i, k: (0, k)),     # w1_out tile
                pl.BlockSpec((1, tk), lambda i, k: (0, k)),       # b1_out tile
                pl.BlockSpec((dim, tk), lambda i, k: (0, k)),     # w1_gate tile
                pl.BlockSpec((1, tk), lambda i, k: (0, k)),       # b1_gate tile
                pl.BlockSpec((tk, dim), lambda i, k: (k, 0)),     # w2 tile
                pl.BlockSpec((1, dim), lambda i, k: (0, 0)),      # b2
            ],
            out_specs=pl.BlockSpec((tm, dim), lambda i, k: (i, 0)),
            scratch_shapes=[
                pltpu.VMEM((tm, dim), jnp.float32),               # LayerNorm(x)
                pltpu.VMEM((tm, dim), jnp.float32),               # f32 accumulator
            ],
        ),
        compiler_params=pltpu.CompilerParams(
            dimension_semantics=("parallel", "arbitrary"),
            vmem_limit_bytes=vmem_limit,
        ),
    )(x2d, gamma2d, beta2d, w1_out, b1_out, w1_gate, b1_gate, w2, b2_2d)

    return out2d[:rows].reshape(batch, seq, dim)


def _reference(x, gamma, beta, w1, b1, w2, b2, eps=1e-5):
    """Pure-JAX reference mirroring the PyTorch module (eval mode)."""
    xf = x.astype(jnp.float32)
    mean = jnp.mean(xf, axis=-1, keepdims=True)
    var = jnp.mean((xf - mean) ** 2, axis=-1, keepdims=True)
    xn = (xf - mean) / jnp.sqrt(var + eps) * gamma + beta
    h = xn @ w1 + b1
    out, gate = jnp.split(h, 2, axis=-1)
    g = out * jax.nn.sigmoid(gate)
    return (g @ w2 + b2).astype(x.dtype)


if __name__ == "__main__":
    batch, seq, dim = 2, 16, 128     # dim multiple of 128 -> lane-dense output
    expansion_factor = 4
    inner = dim * expansion_factor   # 512

    key = jax.random.PRNGKey(0)
    kx, kg, kb, kw1, kb1, kw2, kb2 = jax.random.split(key, 7)

    x = jax.random.normal(kx, (batch, seq, dim), dtype=jnp.float32)

    gamma = jnp.ones((dim,), jnp.float32) + 0.01 * jax.random.normal(kg, (dim,))
    beta = 0.01 * jax.random.normal(kb, (dim,))
    w1 = jax.random.normal(kw1, (dim, 2 * inner), jnp.float32) / jnp.sqrt(dim)
    b1 = 0.01 * jax.random.normal(kb1, (2 * inner,), jnp.float32)
    w2 = jax.random.normal(kw2, (inner, dim), jnp.float32) / jnp.sqrt(inner)
    b2 = 0.01 * jax.random.normal(kb2, (dim,), jnp.float32)

    y_ref = _reference(x, gamma, beta, w1, b1, w2, b2)

    # 1) Default tiling (single row block, single inner block here).
    y = jax.block_until_ready(conformer_feed_forward(x, gamma, beta, w1, b1, w2, b2))
    assert y.shape == (batch, seq, dim)
    assert jnp.allclose(y, y_ref, atol=1e-3, rtol=1e-3), "mismatch (default tiling)"

    # 2) Force multi-block grid (4 row blocks x 4 inner blocks) to exercise the
    #    accumulator init/finalize path.
    y2 = jax.block_until_ready(
        conformer_feed_forward(x, gamma, beta, w1, b1, w2, b2,
                               block_rows=8, inner_block=128))
    assert jnp.allclose(y2, y_ref, atol=1e-3, rtol=1e-3), "mismatch (multi-block)"

    # 3) Ragged row count -> exercises wrapper-side row padding.
    x3 = x[:, :15, :]
    y3 = jax.block_until_ready(conformer_feed_forward(x3, gamma, beta, w1, b1, w2, b2))
    y3_ref = _reference(x3, gamma, beta, w1, b1, w2, b2)
    assert jnp.allclose(y3, y3_ref, atol=1e-3, rtol=1e-3), "mismatch (padded rows)"

    print("KERNEL_OK")
</pallas_src>

<mosaic_0001>
module attributes {stable_mosaic.version = 11 : i64} {
  func.func @_ffn_kernel(%arg0: i32, %arg1: i32, %arg2: memref<32x128xf32, #tpu.memory_space<vmem>>, %arg3: memref<1x128xf32, #tpu.memory_space<vmem>>, %arg4: memref<1x128xf32, #tpu.memory_space<vmem>>, %arg5: memref<128x512xf32, #tpu.memory_space<vmem>>, %arg6: memref<1x512xf32, #tpu.memory_space<vmem>>, %arg7: memref<128x512xf32, #tpu.memory_space<vmem>>, %arg8: memref<1x512xf32, #tpu.memory_space<vmem>>, %arg9: memref<512x128xf32, #tpu.memory_space<vmem>>, %arg10: memref<1x128xf32, #tpu.memory_space<vmem>>, %arg11: memref<32x128xf32, #tpu.memory_space<vmem>>, %arg12: memref<32x128xf32, #tpu.memory_space<vmem>>, %arg13: memref<32x128xf32, #tpu.memory_space<vmem>>) attributes {dimension_semantics = [#tpu.dimension_semantics<parallel>, #tpu.dimension_semantics<arbitrary>], iteration_bounds = array<i64: 1, 1>, scalar_prefetch = 0 : i64, scratch_operands = 2 : i64, tpu.core_type = #tpu.core_type<tc>, window_params = [{transform_indices = @transform_0, window_bounds = array<i64: 32, 128>}, {pipeline_mode = #tpu.pipeline_mode<synchronous>, transform_indices = @transform_1, window_bounds = array<i64: 1, 128>}, {pipeline_mode = #tpu.pipeline_mode<synchronous>, transform_indices = @transform_2, window_bounds = array<i64: 1, 128>}, {transform_indices = @transform_3, window_bounds = array<i64: 128, 512>}, {transform_indices = @transform_4, window_bounds = array<i64: 1, 512>}, {transform_indices = @transform_5, window_bounds = array<i64: 128, 512>}, {transform_indices = @transform_6, window_bounds = array<i64: 1, 512>}, {transform_indices = @transform_7, window_bounds = array<i64: 512, 128>}, {pipeline_mode = #tpu.pipeline_mode<synchronous>, transform_indices = @transform_8, window_bounds = array<i64: 1, 128>}, {transform_indices = @transform_9, window_bounds = array<i64: 32, 128>}]} {
    %c0_i32 = arith.constant 0 : i32
    %0 = arith.cmpi eq, %arg1, %c0_i32 : i32
    %1 = arith.extui %0 : i1 to i32
    %c0_i32_0 = arith.constant 0 : i32
    %2 = arith.cmpi ne, %1, %c0_i32_0 : i32
    scf.if %2 {
      %c0_21 = arith.constant 0 : index
      %c0_22 = arith.constant 0 : index
      %28 = vector.load %arg2[%c0_21, %c0_22] : memref<32x128xf32, #tpu.memory_space<vmem>>, vector<32x128xf32>
      %cst_23 = arith.constant dense<0.000000e+00> : vector<32xf32>
      %29 = vector.multi_reduction <add>, %28, %cst_23 [1] : vector<32x128xf32> to vector<32xf32>
      %30 = vector.shape_cast %29 : vector<32xf32> to vector<32x1xf32>
      %cst_24 = arith.constant 1.280000e+02 : f32
      %31 = vector.broadcast %cst_24 : f32 to vector<32x1xf32>
      %32 = arith.divf %30, %31 : vector<32x1xf32>
      %33 = vector.broadcast %32 : vector<32x1xf32> to vector<32x128xf32>
      %34 = arith.subf %28, %33 : vector<32x128xf32>
      %35 = vector.broadcast %32 : vector<32x1xf32> to vector<32x128xf32>
      %36 = arith.subf %28, %35 : vector<32x128xf32>
      %37 = arith.mulf %34, %36 : vector<32x128xf32>
      %cst_25 = arith.constant dense<0.000000e+00> : vector<32xf32>
      %38 = vector.multi_reduction <add>, %37, %cst_25 [1] : vector<32x128xf32> to vector<32xf32>
      %39 = vector.shape_cast %38 : vector<32xf32> to vector<32x1xf32>
      %cst_26 = arith.constant 1.280000e+02 : f32
      %40 = vector.broadcast %cst_26 : f32 to vector<32x1xf32>
      %41 = arith.divf %39, %40 : vector<32x1xf32>
      %42 = vector.broadcast %32 : vector<32x1xf32> to vector<32x128xf32>
      %43 = arith.subf %28, %42 : vector<32x128xf32>
      %cst_27 = arith.constant 9.99999974E-6 : f32
      %44 = vector.broadcast %cst_27 : f32 to vector<32x1xf32>
      %45 = arith.addf %41, %44 : vector<32x1xf32>
      %46 = math.rsqrt %45 : vector<32x1xf32>
      %47 = vector.broadcast %46 : vector<32x1xf32> to vector<32x128xf32>
      %48 = arith.mulf %43, %47 : vector<32x128xf32>
      %c0_28 = arith.constant 0 : index
      %c0_29 = arith.constant 0 : index
      %49 = vector.load %arg3[%c0_28, %c0_29] : memref<1x128xf32, #tpu.memory_space<vmem>>, vector<1x128xf32>
      %50 = vector.broadcast %49 : vector<1x128xf32> to vector<32x128xf32>
      %51 = arith.mulf %48, %50 : vector<32x128xf32>
      %c0_30 = arith.constant 0 : index
      %c0_31 = arith.constant 0 : index
      %52 = vector.load %arg4[%c0_30, %c0_31] : memref<1x128xf32, #tpu.memory_space<vmem>>, vector<1x128xf32>
      %53 = vector.broadcast %52 : vector<1x128xf32> to vector<32x128xf32>
      %54 = arith.addf %51, %53 : vector<32x128xf32>
      %c0_32 = arith.constant 0 : index
      %c0_33 = arith.constant 0 : index
      %55 = vector.load %arg12[%c0_32, %c0_33] : memref<32x128xf32, #tpu.memory_space<vmem>>, vector<32x128xf32>
      tpu.vector_store %arg12[%c0_32, %c0_33], %54 {strides = array<i32>} : memref<32x128xf32, #tpu.memory_space<vmem>>, vector<32x128xf32>,
      %cst_34 = arith.constant 0.000000e+00 : f32
      %56 = vector.broadcast %cst_34 : f32 to vector<32x128xf32>
      %c0_35 = arith.constant 0 : index
      %c0_36 = arith.constant 0 : index
      %57 = vector.load %arg13[%c0_35, %c0_36] : memref<32x128xf32, #tpu.memory_space<vmem>>, vector<32x128xf32>
      tpu.vector_store %arg13[%c0_35, %c0_36], %56 {strides = array<i32>} : memref<32x128xf32, #tpu.memory_space<vmem>>, vector<32x128xf32>,
    } else {
    }
    %c0 = arith.constant 0 : index
    %c0_1 = arith.constant 0 : index
    %3 = vector.load %arg12[%c0, %c0_1] : memref<32x128xf32, #tpu.memory_space<vmem>>, vector<32x128xf32>
    %c0_2 = arith.constant 0 : index
    %c0_3 = arith.constant 0 : index
    %4 = vector.load %arg5[%c0_2, %c0_3] : memref<128x512xf32, #tpu.memory_space<vmem>>, vector<128x512xf32>
    %cst = arith.constant dense<0.000000e+00> : vector<32x512xf32>
    %5 = tpu.matmul %3, %4, %cst {dimension_numbers = #tpu.dot_dimension_numbers<[1], [0], [0], [1], [0, 0, 1, 1], [], []>} : vector<32x128xf32>, vector<128x512xf32>, vector<32x512xf32> -> vector<32x512xf32>
    %c0_4 = arith.constant 0 : index
    %c0_5 = arith.constant 0 : index
    %6 = vector.load %arg6[%c0_4, %c0_5] : memref<1x512xf32, #tpu.memory_space<vmem>>, vector<1x512xf32>
    %7 = vector.broadcast %6 : vector<1x512xf32> to vector<32x512xf32>
    %8 = arith.addf %5, %7 : vector<32x512xf32>
    %c0_6 = arith.constant 0 : index
    %c0_7 = arith.constant 0 : index
    %9 = vector.load %arg7[%c0_6, %c0_7] : memref<128x512xf32, #tpu.memory_space<vmem>>, vector<128x512xf32>
    %cst_8 = arith.constant dense<0.000000e+00> : vector<32x512xf32>
    %10 = tpu.matmul %3, %9, %cst_8 {dimension_numbers = #tpu.dot_dimension_numbers<[1], [0], [0], [1], [0, 0, 1, 1], [], []>} : vector<32x128xf32>, vector<128x512xf32>, vector<32x512xf32> -> vector<32x512xf32>
    %c0_9 = arith.constant 0 : index
    %c0_10 = arith.constant 0 : index
    %11 = vector.load %arg8[%c0_9, %c0_10] : memref<1x512xf32, #tpu.memory_space<vmem>>, vector<1x512xf32>
    %12 = vector.broadcast %11 : vector<1x512xf32> to vector<32x512xf32>
    %13 = arith.addf %10, %12 : vector<32x512xf32>
    %14 = arith.negf %13 : vector<32x512xf32>
    %15 = math.exp %14 : vector<32x512xf32>
    %cst_11 = arith.constant 1.000000e+00 : f32
    %16 = vector.broadcast %cst_11 : f32 to vector<32x512xf32>
    %17 = arith.addf %16, %15 : vector<32x512xf32>
    %18 = arith.divf %16, %17 : vector<32x512xf32>
    %19 = arith.mulf %8, %18 : vector<32x512xf32>
    %c0_12 = arith.constant 0 : index
    %c0_13 = arith.constant 0 : index
    %20 = vector.load %arg13[%c0_12, %c0_13] : memref<32x128xf32, #tpu.memory_space<vmem>>, vector<32x128xf32>
    %c0_14 = arith.constant 0 : index
    %c0_15 = arith.constant 0 : index
    %21 = vector.load %arg9[%c0_14, %c0_15] : memref<512x128xf32, #tpu.memory_space<vmem>>, vector<512x128xf32>
    %cst_16 = arith.constant dense<0.000000e+00> : vector<32x128xf32>
    %22 = tpu.matmul %19, %21, %cst_16 {dimension_numbers = #tpu.dot_dimension_numbers<[1], [0], [0], [1], [0, 0, 1, 1], [], []>} : vector<32x512xf32>, vector<512x128xf32>, vector<32x128xf32> -> vector<32x128xf32>
    %23 = arith.addf %20, %22 : vector<32x128xf32>
    %c0_17 = arith.constant 0 : index
    %c0_18 = arith.constant 0 : index
    %24 = vector.load %arg13[%c0_17, %c0_18] : memref<32x128xf32, #tpu.memory_space<vmem>>, vector<32x128xf32>
    tpu.vector_store %arg13[%c0_17, %c0_18], %23 {strides = array<i32>} : memref<32x128xf32, #tpu.memory_space<vmem>>, vector<32x128xf32>,
    %c0_i32_19 = arith.constant 0 : i32
    %25 = arith.cmpi eq, %arg1, %c0_i32_19 : i32
    %26 = arith.extui %25 : i1 to i32
    %c0_i32_20 = arith.constant 0 : i32
    %27 = arith.cmpi ne, %26, %c0_i32_20 : i32
    scf.if %27 {
      %c0_21 = arith.constant 0 : index
      %c0_22 = arith.constant 0 : index
      %28 = vector.load %arg13[%c0_21, %c0_22] : memref<32x128xf32, #tpu.memory_space<vmem>>, vector<32x128xf32>
      %c0_23 = arith.constant 0 : index
      %c0_24 = arith.constant 0 : index
      %29 = vector.load %arg10[%c0_23, %c0_24] : memref<1x128xf32, #tpu.memory_space<vmem>>, vector<1x128xf32>
      %30 = vector.broadcast %29 : vector<1x128xf32> to vector<32x128xf32>
      %31 = arith.addf %28, %30 : vector<32x128xf32>
      %c0_25 = arith.constant 0 : index
      %c0_26 = arith.constant 0 : index
      %32 = vector.load %arg11[%c0_25, %c0_26] : memref<32x128xf32, #tpu.memory_space<vmem>>, vector<32x128xf32>
      tpu.vector_store %arg11[%c0_25, %c0_26], %31 {strides = array<i32>} : memref<32x128xf32, #tpu.memory_space<vmem>>, vector<32x128xf32>,
    } else {
    }
    return
  }
  func.func @transform_0(%arg0: i32, %arg1: i32) -> (i32, i32) {
    %c0_i32 = arith.constant 0 : i32
    %c0_i32_0 = arith.constant 0 : i32
    return %arg0, %c0_i32 : i32, i32
  }
  func.func @transform_1(%arg0: i32, %arg1: i32) -> (i32, i32) {
    %c0_i32 = arith.constant 0 : i32
    %c0_i32_0 = arith.constant 0 : i32
    %c0_i32_1 = arith.constant 0 : i32
    return %c0_i32, %c0_i32_0 : i32, i32
  }
  func.func @transform_2(%arg0: i32, %arg1: i32) -> (i32, i32) {
    %c0_i32 = arith.constant 0 : i32
    %c0_i32_0 = arith.constant 0 : i32
    %c0_i32_1 = arith.constant 0 : i32
    return %c0_i32, %c0_i32_0 : i32, i32
  }
  func.func @transform_3(%arg0: i32, %arg1: i32) -> (i32, i32) {
    %c0_i32 = arith.constant 0 : i32
    %c0_i32_0 = arith.constant 0 : i32
    return %c0_i32, %arg1 : i32, i32
  }
  func.func @transform_4(%arg0: i32, %arg1: i32) -> (i32, i32) {
    %c0_i32 = arith.constant 0 : i32
    %c0_i32_0 = arith.constant 0 : i32
    return %c0_i32, %arg1 : i32, i32
  }
  func.func @transform_5(%arg0: i32, %arg1: i32) -> (i32, i32) {
    %c0_i32 = arith.constant 0 : i32
    %c0_i32_0 = arith.constant 0 : i32
    return %c0_i32, %arg1 : i32, i32
  }
  func.func @transform_6(%arg0: i32, %arg1: i32) -> (i32, i32) {
    %c0_i32 = arith.constant 0 : i32
    %c0_i32_0 = arith.constant 0 : i32
    return %c0_i32, %arg1 : i32, i32
  }
  func.func @transform_7(%arg0: i32, %arg1: i32) -> (i32, i32) {
    %c0_i32 = arith.constant 0 : i32
    %c0_i32_0 = arith.constant 0 : i32
    return %arg1, %c0_i32 : i32, i32
  }
  func.func @transform_8(%arg0: i32, %arg1: i32) -> (i32, i32) {
    %c0_i32 = arith.constant 0 : i32
    %c0_i32_0 = arith.constant 0 : i32
    %c0_i32_1 = arith.constant 0 : i32
    return %c0_i32, %c0_i32_0 : i32, i32
  }
  func.func @transform_9(%arg0: i32, %arg1: i32) -> (i32, i32) {
    %c0_i32 = arith.constant 0 : i32
    %c0_i32_0 = arith.constant 0 : i32
    return %arg0, %c0_i32 : i32, i32
  }
}

</mosaic_0001>

<bundles_post_ra>
// kernel: tpu_custom_call.1
= control target key start
LH: loop header
LB: loop body
LE: loop exit
PB: predicated region body
PF: predicated region fallthrough
CT: control target
= control target key end

     0   :  { %14 = vsyncpa [#allocation5], 0  ;;  %s1950_s0 = inlined_call_operand.hbm [shape: f32[32,128], index: 0, kind: input, shape index: {}]   ;;  %s1951_s1 = inlined_call_operand.vmem [shape: f32[1,128], index: 1, kind: input, shape index: {}]   ;;  %s1952_s2 = inlined_call_operand.vmem [shape: f32[1,128], index: 2, kind: input, shape index: {}]   ;;  %s1953_s3 = inlined_call_operand.hbm [shape: f32[128,512], index: 3, kind: input, shape index: {}]   ;;  %s1954_s4 = inlined_call_operand.vmem [shape: f32[1,512], index: 4, kind: input, shape index: {}]   ;;  %s1955_s5 = inlined_call_operand.hbm [shape: f32[128,512], index: 5, kind: input, shape index: {}]   ;;  %s1956_s6 = inlined_call_operand.vmem [shape: f32[1,512], index: 6, kind: input, shape index: {}]   ;;  %s1957_s7 = inlined_call_operand.hbm [shape: f32[512,128], index: 7, kind: input, shape index: {}]   ;;  %s1958_s8 = inlined_call_operand.vmem [shape: f32[1,128], index: 8, kind: input, shape index: {}]   ;;  %s1959_s9 = inlined_call_operand.hbm [shape: f32[32,128], index: 9, kind: output, shape index: {}]  }
   0x1   :  { %15 = vsyncpa [#allocation8], 0 }
   0x2   :  { %16 = vsyncpa [#allocation11], 0 }
   0x3   :  { %17 = vsyncpa [#allocation6], 0  ;;  %s1601_s30 = smov [#allocation7]   ;;  %s1483_s13 = scalar_lea.hbm %s1953_s3, 8192 }
   0x4   :  { %s39_s10 = sshll.u32 %s1601_s30, 4  ;;  %p1484_p0 = scmp.ne.s32.totalorder %s1953_s3, %s1483_s13  ;;  %s40_s10 = int_to_ptr.vmem [resolvable:$true] %s39_s10 }
   0x5   :  { %p1487_p1 = scmp.lt.u32.totalorder %s1483_s13, %s1953_s3 }
   0x7   :  { %p1489_p2 = pnand %p1487_p1, %p1484_p0 }
   0x9   :  { %1492 = shalt.err (!%p1489_p2)
}
   0xa   :  { %s1493_s18 = scalar_lea.vmem %s40_s10, 8192  ;;  %p1498_p4 = scmp.lt.s32.totalorder %s40_s10, %s40_s10 }
   0xb   :  { %p1494_p3 = scmp.ne.s32.totalorder %s40_s10, %s1493_s18  ;;  %p1499_p5 = scmp.lt.s32.totalorder %s1493_s18, %s1493_s18 }
   0xd   :  { %p1500_p6 = por %p1499_p5, %p1498_p4 }
   0xf   :  { %p1501_p7 = pnand %p1500_p6, %p1494_p3 }
  0x11   :  { %1504 = shalt.err (!%p1501_p7)
}
  0x12   :  { %s1602_s19 = smov 512   ;;  %s1603_s20 = smov 32  }
  0x13   :  { %45 = dma.hbm_to_vmem [thread:$0]  %s1953_s3, 8192, %s40_s10, [#allocation8], %s1602_s19, %s1602_s19, %s1603_s20  }
  0x14   :  { %s1604_s23 = smov [#allocation4]   ;;  %s1505_s27 = scalar_lea.hbm %s1950_s0, 512 }
  0x15   :  { %s23_s24 = sshll.u32 %s1604_s23, 4  ;;  %p1506_p8 = scmp.ne.s32.totalorder %s1950_s0, %s1505_s27  ;;  %s24_s24 = int_to_ptr.vmem [resolvable:$true] %s23_s24 }
  0x16   :  { %p1509_p9 = scmp.lt.u32.totalorder %s1505_s27, %s1950_s0 }
  0x18   :  { %p1511_p10 = pnand %p1509_p9, %p1506_p8 }
  0x1a   :  { %1514 = shalt.err (!%p1511_p10)
}
  0x1b   :  { %s1515_s12 = scalar_lea.vmem %s24_s24, 512  ;;  %p1520_p12 = scmp.lt.s32.totalorder %s24_s24, %s24_s24 }
  0x1c   :  { %p1516_p11 = scmp.ne.s32.totalorder %s24_s24, %s1515_s12  ;;  %p1521_p13 = scmp.lt.s32.totalorder %s1515_s12, %s1515_s12 }
  0x1e   :  { %p1522_p0 = por %p1521_p13, %p1520_p12 }
  0x20   :  { %p1523_p1 = pnand %p1522_p0, %p1516_p11 }
  0x22   :  { %1526 = shalt.err (!%p1523_p1)
}
  0x23   :  { %s1605_s3 = smov 128   ;;  %s1606_s10 = smov 8  }
  0x24   :  { %29 = dma.hbm_to_vmem [thread:$0]  %s1950_s0, 512, %s24_s24, [#allocation5], %s1605_s3, %s1605_s3, %s1606_s10  }
  0x25   :  { %s1607_s15 = smov [#allocation9]   ;;  %s1608_s17 = smov [#allocation10]  }
  0x26   :  { %s53_s16 = sshll.u32 %s1607_s15, 4  ;;  %s67_s18 = sshll.u32 %s1608_s17, 4  ;;  %s54_s16 = int_to_ptr.vmem [resolvable:$true] %s53_s16  ;;  %s1691_s18 = int_to_ptr.vmem [resolvable:$true] %s67_s18 }
  0x27   :  { %s1527_s23 = scalar_lea.hbm %s1955_s5, 8192 }
  0x28   :  { %p1528_p2 = scmp.ne.s32.totalorder %s1955_s5, %s1527_s23  ;;  %p1531_p3 = scmp.lt.u32.totalorder %s1527_s23, %s1955_s5 }
  0x2a   :  { %p1533_p4 = pnand %p1531_p3, %p1528_p2 }
  0x2c   :  { %1536 = shalt.err (!%p1533_p4)
}
  0x2d   :  { %s1537_s0 = scalar_lea.vmem %s54_s16, 8192  ;;  %p1542_p6 = scmp.lt.s32.totalorder %s54_s16, %s54_s16 }
  0x2e   :  { %p1538_p5 = scmp.ne.s32.totalorder %s54_s16, %s1537_s0  ;;  %p1543_p7 = scmp.lt.s32.totalorder %s1537_s0, %s1537_s0 }
  0x30   :  { %p1544_p8 = por %p1543_p7, %p1542_p6 }
  0x32   :  { %p1545_p9 = pnand %p1544_p8, %p1538_p5 }
  0x34   :  { %1548 = shalt.err (!%p1545_p9)
}
  0x35   :  { %59 = dma.hbm_to_vmem [thread:$0]  %s1955_s5, 8192, %s54_s16, [#allocation8], %s1602_s19, %s1602_s19, %s1603_s20  }
  0x36   :  { %s1549_s12 = scalar_lea.hbm %s1957_s7, 8192 }
  0x37   :  { %p1550_p10 = scmp.ne.s32.totalorder %s1957_s7, %s1549_s12  ;;  %p1553_p11 = scmp.lt.u32.totalorder %s1549_s12, %s1957_s7 }
  0x39   :  { %p1555_p12 = pnand %p1553_p11, %p1550_p10 }
  0x3b   :  { %1558 = shalt.err (!%p1555_p12)
}
  0x3c   :  { %s1559_s21 = scalar_lea.vmem %s1691_s18, 8192  ;;  %p1564_p0 = scmp.lt.s32.totalorder %s1691_s18, %s1691_s18 }
  0x3d   :  { %p1560_p13 = scmp.ne.s32.totalorder %s1691_s18, %s1559_s21  ;;  %p1565_p1 = scmp.lt.s32.totalorder %s1559_s21, %s1559_s21 }
  0x3f   :  { %p1566_p2 = por %p1565_p1, %p1564_p0 }
  0x41   :  { %p1567_p3 = pnand %p1566_p2, %p1560_p13 }
  0x43   :  { %1570 = shalt.err (!%p1567_p3)
}
  0x44   :  { %73 = dma.hbm_to_vmem [thread:$0]  %s1957_s7, 8192, %s1691_s18, [#allocation11], %s1605_s3, %s1605_s3, %s1606_s10  }
  0x45   :  { %1593 = dma.done.wait [#allocation5], 512  }
  0x46   :  { %1594 = vsyncadd [#allocation5], 4294966784 }
  0x47   :  { %1595 = dma.done.wait [#allocation8], 16384  }
  0x48   :  { %1596 = vsyncadd [#allocation8], 4294950912 }
  0x49   :  { %1597 = dma.done.wait [#allocation11], 8192  }
  0x4a   :  { %1598 = vsyncadd [#allocation11], 4294959104  ;;  %v92_v0 = vld [vmem:[#allocation4] sm:$0xff]  ;;  %v94_v1 = vld [vmem:[#allocation4 + $0x10] sm:$0xff] }
  0x4b   :  { %96 = vadd.xlane.f32.xlu0 %v92_v0  ;;  %100 = vadd.xlane.f32.xlu1 %v94_v1  ;;  %v1728_v2 = vld [vmem:[#allocation4 + $0x8] sm:$0xff]  ;;  %v1730_v3 = vld [vmem:[#allocation4 + $0x18] sm:$0xff]  ;;  %v175_v9 = vld [vmem:[#allocation7] sm:$0xff] }
  0x4c   :  { %v176_v4 = vld [vmem:[#allocation7 + $0x8] sm:$0xff]  ;;  %v178_v6 = vld [vmem:[#allocation7 + $0x18] sm:$0xff]  ;;  %v179_v10 = vld [vmem:[#allocation7 + $0x20] sm:$0xff] }
  0x4d   :  { %v180_v5 = vld [vmem:[#allocation7 + $0x28] sm:$0xff]  ;;  %v182_v8 = vld [vmem:[#allocation7 + $0x38] sm:$0xff]  ;;  %v1211_v12 = vpack.c.bf16 %v179_v10, %v175_v9  ;;  %v177_v13 = vld [vmem:[#allocation7 + $0x10] sm:$0xff] }
  0x4e   :  { %v1209_v7 = vpack.c.bf16 %v180_v5, %v176_v4  ;;  %v1241_v11 = vpack.c.bf16 %v182_v8, %v178_v6  ;;  %v181_v14 = vld [vmem:[#allocation7 + $0x30] sm:$0xff]  ;;  %v184_v15 = vld [vmem:[#allocation7 + $0x48] sm:$0xff]  ;;  %v186_v18 = vld [vmem:[#allocation7 + $0x58] sm:$0xff] }
  0x4f   :  { %98 = vadd.xlane.f32.xlu0 %v1728_v2  ;;  %102 = vadd.xlane.f32.xlu1 %v1730_v3  ;;  %v1243_v16 = vpack.c.bf16 %v181_v14, %v177_v13  ;;  %v188_v17 = vld [vmem:[#allocation7 + $0x68] sm:$0xff]  ;;  %v190_v19 = vld [vmem:[#allocation7 + $0x78] sm:$0xff]  ;;  %v183_v22 = vld [vmem:[#allocation7 + $0x40] sm:$0xff] }
  0x50   :  { %1210 = vmatprep.subr.bf16.mxu0 %v1209_v7  ;;  %1242 = vmatprep.subr.bf16.mxu1 %v1241_v11  ;;  %v1213_v20 = vpack.c.bf16 %v188_v17, %v184_v15  ;;  %v1245_v21 = vpack.c.bf16 %v190_v19, %v186_v18  ;;  %v187_v23 = vld [vmem:[#allocation7 + $0x60] sm:$0xff]  ;;  %v185_v24 = vld [vmem:[#allocation7 + $0x50] sm:$0xff]  ;;  %v192_v27 = vld [vmem:[#allocation7 + $0x88] sm:$0xff] }
  0x51   :  { %1212 = vmatpush1.bf16.msra.mxu0 %v1211_v12  ;;  %1244 = vmatpush1.bf16.msra.mxu1 %v1243_v16  ;;  %v1215_v25 = vpack.c.bf16 %v187_v23, %v183_v22  ;;  %v189_v26 = vld [vmem:[#allocation7 + $0x70] sm:$0xff]  ;;  %v196_v28 = vld [vmem:[#allocation7 + $0xa8] sm:$0xff]  ;;  %v194_v31 = vld [vmem:[#allocation7 + $0x98] sm:$0xff] }
  0x52   :  { %1214 = vmatprep.subr.bf16.mxu0 %v1213_v20  ;;  %1246 = vmatprep.subr.bf16.mxu1 %v1245_v21  ;;  %v1247_v29 = vpack.c.bf16 %v189_v26, %v185_v24  ;;  %v1217_v30 = vpack.c.bf16 %v196_v28, %v192_v27  ;;  %v198_v32 = vld [vmem:[#allocation7 + $0xb8] sm:$0xff]  ;;  %v191_v33 = vld [vmem:[#allocation7 + $0x80] sm:$0xff]  ;;  %v193_v36 = vld [vmem:[#allocation7 + $0x90] sm:$0xff] }
  0x53   :  { %v1249_v34 = vpack.c.bf16 %v198_v32, %v194_v31  ;;  %v195_v35 = vld [vmem:[#allocation7 + $0xa0] sm:$0xff]  ;;  %v197_v37 = vld [vmem:[#allocation7 + $0xb0] sm:$0xff]  ;;  %v200_v56 = vld [vmem:[#allocation7 + $0xc8] sm:$0xff] }
  0x54   :  { %v1219_v38 = vpack.c.bf16 %v195_v35, %v191_v33  ;;  %v1251_v39 = vpack.c.bf16 %v197_v37, %v193_v36  ;;  %v204_v57 = vld [vmem:[#allocation7 + $0xe8] sm:$0xff]  ;;  %v202_v58 = vld [vmem:[#allocation7 + $0xd8] sm:$0xff]  ;;  %v199_v61 = vld [vmem:[#allocation7 + $0xc0] sm:$0xff] }
  0x55   :  { %1216 = vmatpush1.bf16.msra.mxu0 %v1215_v25  ;;  %1248 = vmatpush1.bf16.msra.mxu1 %v1247_v29  ;;  %v1221_v59 = vpack.c.bf16 %v204_v57, %v200_v56  ;;  %v206_v60 = vld [vmem:[#allocation7 + $0xf8] sm:$0xff]  ;;  %v203_v62 = vld [vmem:[#allocation7 + $0xe0] sm:$0xff]  ;;  %v208_v4 = vld [vmem:[#allocation7 + $0x108] sm:$0xff] }
  0x56   :  { %1218 = vmatprep.subr.bf16.mxu0 %v1217_v30  ;;  %1250 = vmatprep.subr.bf16.mxu1 %v1249_v34  ;;  %v1253_v63 = vpack.c.bf16 %v206_v60, %v202_v58  ;;  %v212_v5 = vld [vmem:[#allocation7 + $0x128] sm:$0xff]  ;;  %v210_v6 = vld [vmem:[#allocation7 + $0x118] sm:$0xff]  ;;  %v207_v9 = vld [vmem:[#allocation7 + $0x100] sm:$0xff] }
  0x57   :  { %v1225_v7 = vpack.c.bf16 %v212_v5, %v208_v4  ;;  %v214_v8 = vld [vmem:[#allocation7 + $0x138] sm:$0xff]  ;;  %v211_v10 = vld [vmem:[#allocation7 + $0x120] sm:$0xff]  ;;  %v209_v13 = vld [vmem:[#allocation7 + $0x110] sm:$0xff] }
  0x58   :  { %v1257_v11 = vpack.c.bf16 %v214_v8, %v210_v6  ;;  %v1227_v12 = vpack.c.bf16 %v211_v10, %v207_v9  ;;  %v213_v14 = vld [vmem:[#allocation7 + $0x130] sm:$0xff]  ;;  %v216_v16 = vld [vmem:[#allocation7 + $0x148] sm:$0xff]  ;;  %v218_v18 = vld [vmem:[#allocation7 + $0x158] sm:$0xff] }
  0x59   :  { %1220 = vmatpush1.bf16.msra.mxu0 %v1219_v38  ;;  %1252 = vmatpush1.bf16.msra.mxu1 %v1251_v39  ;;  %v1259_v15 = vpack.c.bf16 %v213_v14, %v209_v13  ;;  %v220_v17 = vld [vmem:[#allocation7 + $0x168] sm:$0xff]  ;;  %v222_v20 = vld [vmem:[#allocation7 + $0x178] sm:$0xff]  ;;  %v215_v21 = vld [vmem:[#allocation7 + $0x140] sm:$0xff] }
  0x5a   :  { %1222 = vmatprep.subr.bf16.mxu0 %v1221_v59  ;;  %1254 = vmatprep.subr.bf16.mxu1 %v1253_v63  ;;  %v1229_v19 = vpack.c.bf16 %v220_v17, %v216_v16  ;;  %v219_v22 = vld [vmem:[#allocation7 + $0x160] sm:$0xff]  ;;  %v1261_v23 = vpack.c.bf16 %v222_v20, %v218_v18  ;;  %v217_v25 = vld [vmem:[#allocation7 + $0x150] sm:$0xff]  ;;  %v224_v28 = vld [vmem:[#allocation7 + $0x188] sm:$0xff] }
  0x5b   :  { %v1231_v24 = vpack.c.bf16 %v219_v22, %v215_v21  ;;  %v221_v26 = vld [vmem:[#allocation7 + $0x170] sm:$0xff]  ;;  %v228_v29 = vld [vmem:[#allocation7 + $0x1a8] sm:$0xff]  ;;  %v226_v30 = vld [vmem:[#allocation7 + $0x198] sm:$0xff] }
  0x5c   :  { %v1263_v27 = vpack.c.bf16 %v221_v26, %v217_v25  ;;  %v1233_v31 = vpack.c.bf16 %v228_v29, %v224_v28  ;;  %v230_v32 = vld [vmem:[#allocation7 + $0x1b8] sm:$0xff]  ;;  %v223_v33 = vld [vmem:[#allocation7 + $0x180] sm:$0xff]  ;;  %v225_v37 = vld [vmem:[#allocation7 + $0x190] sm:$0xff] }
  0x5d   :  { %v227_v34 = vld [vmem:[#allocation7 + $0x1a0] sm:$0xff]  ;;  %v1265_v35 = vpack.c.bf16 %v230_v32, %v226_v30  ;;  %v229_v38 = vld [vmem:[#allocation7 + $0x1b0] sm:$0xff]  ;;  %v232_v39 = vld [vmem:[#allocation7 + $0x1c8] sm:$0xff] }
  0x5e   :  { %v1235_v36 = vpack.c.bf16 %v227_v34, %v223_v33  ;;  %v440_v56 = vld [vmem:[#allocation9 + $0x8] sm:$0xff]  ;;  %v442_v60 = vld [vmem:[#allocation9 + $0x18] sm:$0xff]  ;;  %v439_v13 = vld [vmem:[#allocation9] sm:$0xff] }
  0x5f   :  { %v444_v57 = vld [vmem:[#allocation9 + $0x28] sm:$0xff]  ;;  %v441_v16 = vld [vmem:[#allocation9 + $0x10] sm:$0xff]  ;;  %v1763_v18 = vld [vmem:[%s1952_s2] ss:$0 sm:$0xff] }
  0x60   :  { %v1273_v59 = vpack.c.bf16 %v444_v57, %v440_v56  ;;  %v445_v17 = vld [vmem:[#allocation9 + $0x30] sm:$0xff]  ;;  %v452_v21 = vld [vmem:[#allocation9 + $0x68] sm:$0xff]  ;;  %v450_v22 = vld [vmem:[#allocation9 + $0x58] sm:$0xff] }
  0x61   :  { %v1307_v26 = vpack.c.bf16 %v445_v17, %v441_v16  ;;  %v451_v30 = vld [vmem:[#allocation9 + $0x60] sm:$0xff]  ;;  %v453_v32 = vld [vmem:[#allocation9 + $0x70] sm:$0xff]  ;;  %v464_v56 = vld [vmem:[#allocation9 + $0xc8] sm:$0xff] }
  0x62   :  { %v468_v57 = vld [vmem:[#allocation9 + $0xe8] sm:$0xff]  ;;  %v473_v16 = vld [vmem:[#allocation9 + $0x110] sm:$0xff] }
  0x63   :  { %v477_v17 = vld [vmem:[#allocation9 + $0x130] sm:$0xff] }
  0xd8   :  { %v97_v40 = vpop.xlane.xlu0 %96  ;;  %v101_v41 = vpop.xlane.xlu1 %100 }
  0xd9   :  { %v105_v42 = vmul.f32 0.0078125, %v97_v40  ;;  %v107_v43 = vmul.f32 0.0078125, %v101_v41  ;;  %v1267_v40 = vpack.c.bf16 %v229_v38, %v225_v37  ;;  %v236_v41 = vld [vmem:[#allocation7 + $0x1e8] sm:$0xff] }
  0xda   :  { %v460_v38 = vld [vmem:[#allocation9 + $0xa8] sm:$0xff] }
  0xdb   :  { %v1734_v44 = vsub.f32 %v92_v0, %v105_v42  ;;  %v1736_v45 = vsub.f32 %v94_v1, %v107_v43  ;;  %v1223_v0 = vpack.c.bf16 %v203_v62, %v199_v61  ;;  %v201_v1 = vld [vmem:[#allocation7 + $0xd0] sm:$0xff]  ;;  %v234_v42 = vld [vmem:[#allocation7 + $0x1d8] sm:$0xff] }
  0xdc   :  { %v99_v46 = vpop.xlane.xlu0 %98  ;;  %v103_v47 = vpop.xlane.xlu1 %102  ;;  %v238_v43 = vld [vmem:[#allocation7 + $0x1f8] sm:$0xff] }
  0xdd   :  { %v106_v48 = vmul.f32 0.0078125, %v99_v46  ;;  %v113_v49 = vmul.f32 %v1734_v44, %v1734_v44  ;;  %v108_v50 = vmul.f32 0.0078125, %v103_v47  ;;  %v115_v53 = vmul.f32 %v1736_v45, %v1736_v45  ;;  %1224 = vmatpush1.bf16.msra.mxu0 %v1223_v0  ;;  %v446_v61 = vld [vmem:[#allocation9 + $0x38] sm:$0xff] }
  0xde   :  { %1226 = vmatprep.subr.bf16.mxu0 %v1225_v7  ;;  %v1609_v46 = vmov 0.0   ;;  %v1237_v47 = vpack.c.bf16 %v236_v41, %v232_v39  ;;  %v1305_v62 = vpack.c.bf16 %v446_v61, %v442_v60  ;;  %v458_v39 = vld [vmem:[#allocation9 + $0x98] sm:$0xff] }
  0xdf   :  { %v1741_v51 = vsub.f32 %v1728_v2, %v106_v48  ;;  %117 = vadd.xlane.f32.xlu0 %v113_v49  ;;  %v1744_v52 = vsub.f32 %v1730_v3, %v108_v50  ;;  %v205_v2 = vld [vmem:[#allocation7 + $0xf0] sm:$0xff]  ;;  %325 = vmatprep.mubr.f32.mxu0 %v1609_v46  ;;  %v1269_v48 = vpack.c.bf16 %v238_v43, %v234_v42  ;;  %v231_v49 = vld [vmem:[#allocation7 + $0x1c0] sm:$0xff] }
  0xe0   :  { %v1255_v3 = vpack.c.bf16 %v205_v2, %v201_v1  ;;  %v235_v50 = vld [vmem:[#allocation7 + $0x1e0] sm:$0xff]  ;;  %414 = vmatprep.mubr.f32.mxu1 %v1609_v46 }
  0xe1   :  { %v114_v54 = vmul.f32 %v1741_v51, %v1741_v51  ;;  %v116_v55 = vmul.f32 %v1744_v52, %v1744_v52  ;;  %1228 = vmatpush1.bf16.msra.mxu0 %v1227_v12  ;;  %v1757_v12 = vld [vmem:[%s1951_s1] ss:$0 sm:$0xff] }
  0xe2   :  { %1256 = vmatpush1.bf16.msra.mxu1 %v1255_v3  ;;  %1230 = vmatprep.subr.bf16.mxu0 %v1229_v19  ;;  %v448_v19 = vld [vmem:[#allocation9 + $0x48] sm:$0xff]  ;;  %v455_v43 = vld [vmem:[#allocation9 + $0x80] sm:$0xff] }
  0xe3   :  { %121 = vadd.xlane.f32.xlu0 %v115_v53  ;;  %119 = vadd.xlane.f32.xlu1 %v114_v54  ;;  %v233_v53 = vld [vmem:[#allocation7 + $0x1d0] sm:$0xff]  ;;  %v1239_v54 = vpack.c.bf16 %v235_v50, %v231_v49  ;;  %v1277_v33 = vpack.c.bf16 %v452_v21, %v448_v19  ;;  %v480_v19 = vld [vmem:[#allocation9 + $0x148] sm:$0xff]  ;;  %v482_v21 = vld [vmem:[#allocation9 + $0x158] sm:$0xff] }
  0xe4   :  { %1258 = vmatprep.subr.bf16.mxu1 %v1257_v11  ;;  %v457_v49 = vld [vmem:[#allocation9 + $0x90] sm:$0xff] }
  0xe5   :  { %1232 = vmatpush1.bf16.msra.mxu0 %v1231_v24  ;;  %v461_v50 = vld [vmem:[#allocation9 + $0xb0] sm:$0xff] }
  0xe6   :  { %1260 = vmatpush1.bf16.msra.mxu1 %v1259_v15  ;;  %1234 = vmatprep.subr.bf16.mxu0 %v1233_v31  ;;  %v443_v15 = vld [vmem:[#allocation9 + $0x20] sm:$0xff]  ;;  %v449_v31 = vld [vmem:[#allocation9 + $0x50] sm:$0xff]  ;;  %v1315_v61 = vpack.c.bf16 %v461_v50, %v457_v49 }
  0xe7   :  { %123 = vadd.xlane.f32.xlu1 %v116_v55  ;;  %1262 = vmatprep.subr.bf16.mxu1 %v1261_v23  ;;  %v237_v55 = vld [vmem:[#allocation7 + $0x1f0] sm:$0xff]  ;;  %v454_v23 = vld [vmem:[#allocation9 + $0x78] sm:$0xff]  ;;  %v1275_v25 = vpack.c.bf16 %v443_v15, %v439_v13  ;;  %v1311_v42 = vpack.c.bf16 %v453_v32, %v449_v31  ;;  %v492_v31 = vld [vmem:[#allocation9 + $0x1a8] sm:$0xff] }
  0xe8   :  { %v1271_v58 = vpack.c.bf16 %v237_v55, %v233_v53  ;;  %v1309_v34 = vpack.c.bf16 %v454_v23, %v450_v22  ;;  %v486_v22 = vld [vmem:[#allocation9 + $0x178] sm:$0xff]  ;;  %v495_v50 = vld [vmem:[#allocation9 + $0x1c0] sm:$0xff] }
  0xe9   :  { %1236 = vmatpush1.bf16.msra.mxu0 %v1235_v36  ;;  %v490_v32 = vld [vmem:[#allocation9 + $0x198] sm:$0xff] }
  0xea   :  { %1264 = vmatpush1.bf16.msra.mxu1 %v1263_v27  ;;  %1238 = vmatprep.subr.bf16.mxu0 %v1237_v47  ;;  %v447_v27 = vld [vmem:[#allocation9 + $0x40] sm:$0xff] }
  0xeb   :  { %1266 = vmatprep.subr.bf16.mxu1 %v1265_v35  ;;  %v456_v35 = vld [vmem:[#allocation9 + $0x88] sm:$0xff] }
  0xed   :  { %1240 = vmatpush1.bf16.msra.mxu0 %v1239_v54  ;;  %v1281_v54 = vpack.c.bf16 %v460_v38, %v456_v35 }
  0xee   :  { %1268 = vmatpush1.bf16.msra.mxu1 %v1267_v40  ;;  %1274 = vmatprep.subr.bf16.mxu0 %v1273_v59  ;;  %v462_v40 = vld [vmem:[#allocation9 + $0xb8] sm:$0xff] }
  0xef   :  { %1270 = vmatprep.subr.bf16.mxu1 %v1269_v48  ;;  %v459_v48 = vld [vmem:[#allocation9 + $0xa0] sm:$0xff]  ;;  %v1313_v55 = vpack.c.bf16 %v462_v40, %v458_v39  ;;  %v470_v59 = vld [vmem:[#allocation9 + $0xf8] sm:$0xff]  ;;  %v489_v40 = vld [vmem:[#allocation9 + $0x190] sm:$0xff] }
  0xf0   :  { %v1283_v60 = vpack.c.bf16 %v459_v48, %v455_v43  ;;  %v498_v43 = vld [vmem:[#allocation9 + $0x1d8] sm:$0xff] }
  0xf2   :  { %1272 = vmatpush1.bf16.msra.mxu1 %v1271_v58  ;;  %v466_v58 = vld [vmem:[#allocation9 + $0xd8] sm:$0xff] }
  0xf3   :  { %1306 = vmatprep.subr.bf16.mxu1 %v1305_v62  ;;  %v463_v62 = vld [vmem:[#allocation9 + $0xc0] sm:$0xff] }
 0x16c   :  { %v118_v63 = vpop.xlane.xlu0 %117 }
 0x16d   :  { %v125_v0 = vmul.f32 0.0078125, %v118_v63  ;;  %v467_v63 = vld [vmem:[#allocation9 + $0xe0] sm:$0xff] }
 0x16f   :  { %v129_v1 = vadd.f32 1e-05, %v125_v0 }
 0x170   :  { %v120_v2 = vpop.xlane.xlu1 %119  ;;  %v122_v3 = vpop.xlane.xlu0 %121 }
 0x171   :  { %1411 = vrsqrt.f32 %v129_v1  ;;  %v126_v4 = vmul.f32 0.0078125, %v120_v2  ;;  %v127_v5 = vmul.f32 0.0078125, %v122_v3  ;;  %v465_v1 = vld [vmem:[#allocation9 + $0xd0] sm:$0xff]  ;;  %v472_v3 = vld [vmem:[#allocation9 + $0x108] sm:$0xff] }
 0x172   :  { %v469_v2 = vld [vmem:[#allocation9 + $0xf0] sm:$0xff] }
 0x173   :  { %v130_v6 = vadd.f32 1e-05, %v126_v4  ;;  %v131_v7 = vadd.f32 1e-05, %v127_v5  ;;  %v1285_v4 = vpack.c.bf16 %v468_v57, %v464_v56  ;;  %v1317_v5 = vpack.c.bf16 %v470_v59, %v466_v58  ;;  %v497_v56 = vld [vmem:[#allocation9 + $0x1d0] sm:$0xff] }
 0x174   :  { %v124_v8 = vpop.xlane.xlu1 %123  ;;  %v501_v57 = vld [vmem:[#allocation9 + $0x1f0] sm:$0xff] }
 0x175   :  { %1413 = vrsqrt.f32 %v130_v6  ;;  %v128_v9 = vmul.f32 0.0078125, %v124_v8  ;;  %v476_v6 = vld [vmem:[#allocation9 + $0x128] sm:$0xff]  ;;  %v478_v8 = vld [vmem:[#allocation9 + $0x138] sm:$0xff]  ;;  %v1335_v59 = vpack.c.bf16 %v501_v57, %v497_v56  ;;  %v845_v56 = vld [vmem:[#allocation10 + $0xd0] sm:$0xff] }
 0x176   :  { %1415 = vrsqrt.f32 %v131_v7  ;;  %v474_v7 = vld [vmem:[#allocation9 + $0x118] sm:$0xff] }
 0x177   :  { %v132_v10 = vadd.f32 1e-05, %v128_v9  ;;  %v1287_v9 = vpack.c.bf16 %v467_v63, %v463_v62  ;;  %v1321_v15 = vpack.c.bf16 %v478_v8, %v474_v7  ;;  %v868_v62 = vld [vmem:[#allocation10 + $0x188] sm:$0xff]  ;;  %v819_v63 = vld [vmem:[#allocation10] sm:$0xff]  ;;  %v870_v8 = vld [vmem:[#allocation10 + $0x198] sm:$0xff] }
 0x178   :  { %v846_v57 = vld [vmem:[#allocation10 + $0xd8] sm:$0xff] }
 0x179   :  { %1417 = vrsqrt.f32 %v132_v10  ;;  %v1319_v10 = vpack.c.bf16 %v469_v2, %v465_v1 }
 0x17b   :  { %v1412_v11 = vpop.eup %1411 }
 0x17c   :  { %v137_v14 = vmul.f32 %v1412_v11, %v1734_v44  ;;  %v471_v11 = vld [vmem:[#allocation9 + $0x100] sm:$0xff] }
 0x17e   :  { %v148_v20 = vmul.f32 %v1757_v12, %v137_v14  ;;  %v1289_v14 = vpack.c.bf16 %v476_v6, %v472_v3  ;;  %v851_v3 = vld [vmem:[#allocation10 + $0x100] sm:$0xff]  ;;  %v869_v6 = vld [vmem:[#allocation10 + $0x190] sm:$0xff] }
 0x17f   :  { %v1414_v24 = vpop.eup %1413 }
 0x180   :  { %v1416_v28 = vpop.eup %1415  ;;  %v1767_v44 = vadd.f32 %v1763_v18, %v148_v20  ;;  %v138_v29 = vmul.f32 %v1414_v24, %v1741_v51  ;;  %v1279_v51 = vpack.c.bf16 %v451_v30, %v447_v27  ;;  %v484_v20 = vld [vmem:[#allocation9 + $0x168] sm:$0xff]  ;;  %v1323_v24 = vpack.c.bf16 %v477_v17, %v473_v16  ;;  %v839_v16 = vld [vmem:[#allocation10 + $0xa0] sm:$0xff] }
 0x181   :  { %v139_v36 = vmul.f32 %v1416_v28, %v1736_v45  ;;  %v1325_v27 = vpack.c.bf16 %v486_v22, %v482_v21  ;;  %v481_v28 = vld [vmem:[#allocation9 + $0x150] sm:$0xff]  ;;  %v488_v30 = vld [vmem:[#allocation9 + $0x188] sm:$0xff]  ;;  %v823_v22 = vld [vmem:[#allocation10 + $0x20] sm:$0xff] }
 0x182   :  { %326 = vmatmul.mubr.f32.vlgmr.msra.gmra.mrb[0].mxu0 %v1767_v44  ;;  %415 = vmatmul.mubr.f32.vlgmr.msra.gmra.mrb[0].mxu1 %v1767_v44  ;;  %v149_v37 = vmul.f32 %v1757_v12, %v138_v29  ;;  %v485_v29 = vld [vmem:[#allocation9 + $0x170] sm:$0xff]  ;;  %v1297_v38 = vpack.c.bf16 %v492_v31, %v488_v30  ;;  %v840_v17 = vld [vmem:[#allocation10 + $0xa8] sm:$0xff] }
 0x183   :  { %v1418_v41 = vpop.eup %1417  ;;  %1276 = vmatpush1.bf16.msra.mxu0 %v1275_v25  ;;  %1308 = vmatpush1.bf16.msra.mxu1 %v1307_v26  ;;  %v150_v47 = vmul.f32 %v1757_v12, %v139_v36  ;;  %v483_v25 = vld [vmem:[#allocation9 + $0x160] sm:$0xff]  ;;  %v1293_v26 = vpack.c.bf16 %v484_v20, %v480_v19  ;;  %v1327_v35 = vpack.c.bf16 %v485_v29, %v481_v28  ;;  %v872_v21 = vld [vmem:[#allocation10 + $0x1a8] sm:$0xff]  ;;  %v841_v28 = vld [vmem:[#allocation10 + $0xb0] sm:$0xff] }
 0x184   :  { %331 = vmatprep.mubr.f32.mxu0 %v1609_v46  ;;  %420 = vmatprep.mubr.f32.mxu1 %v1609_v46  ;;  %v1777_v45 = vadd.f32 %v1763_v18, %v149_v37  ;;  %v140_v53 = vmul.f32 %v1418_v41, %v1744_v52  ;;  %v487_v36 = vld [vmem:[#allocation9 + $0x180] sm:$0xff]  ;;  %v493_v41 = vld [vmem:[#allocation9 + $0x1b0] sm:$0xff]  ;;  %v1345_v20 = vpack.c.bf16 %v840_v17, %v839_v16  ;;  %v842_v29 = vld [vmem:[#allocation10 + $0xb8] sm:$0xff] }
 0x185   :  { %1278 = vmatprep.subr.bf16.mxu0 %v1277_v33  ;;  %1310 = vmatprep.subr.bf16.mxu1 %v1309_v34  ;;  %v1786_v52 = vadd.f32 %v1763_v18, %v150_v47  ;;  %v494_v33 = vld [vmem:[#allocation9 + $0x1b8] sm:$0xff]  ;;  %v491_v37 = vld [vmem:[#allocation9 + $0x1a0] sm:$0xff]  ;;  %v1331_v49 = vpack.c.bf16 %v493_v41, %v489_v40  ;;  %v873_v30 = vld [vmem:[#allocation10 + $0x1b0] sm:$0xff]  ;;  %v1349_v31 = vpack.c.bf16 %v842_v29, %v841_v28 }
 0x186   :  { %332 = vmatmul.mubr.f32.gmra.mrb[2].mxu0 %v1777_v45  ;;  %421 = vmatmul.mubr.f32.gmra.mrb[2].mxu1 %v1777_v45  ;;  %v151_v0 = vmul.f32 %v1757_v12, %v140_v53  ;;  %v475_v12 = vld [vmem:[#allocation9 + $0x120] sm:$0xff]  ;;  %v1329_v39 = vpack.c.bf16 %v494_v33, %v490_v32  ;;  %v502_v47 = vld [vmem:[#allocation9 + $0x1f8] sm:$0xff]  ;;  %v1299_v48 = vpack.c.bf16 %v491_v37, %v487_v36  ;;  %v825_v33 = vld [vmem:[#allocation10 + $0x30] sm:$0xff] }
 0x187   :  { %1280 = vmatpush1.bf16.msra.mxu0 %v1279_v51  ;;  %1312 = vmatpush1.bf16.msra.mxu1 %v1311_v42  ;;  %v1291_v23 = vpack.c.bf16 %v475_v12, %v471_v11  ;;  %v496_v51 = vld [vmem:[#allocation9 + $0x1c8] sm:$0xff]  ;;  %v1373_v11 = vpack.c.bf16 %v870_v8, %v869_v6  ;;  %v871_v19 = vld [vmem:[#allocation10 + $0x1a0] sm:$0xff]  ;;  %v874_v32 = vld [vmem:[#allocation10 + $0x1b8] sm:$0xff] }
 0x188   :  { %337 = vmatprep.mubr.f32.mxu0 %v1609_v46  ;;  %426 = vmatprep.mubr.f32.mxu1 %v1609_v46  ;;  %v1794_v13 = vadd.f32 %v1763_v18, %v151_v0  ;;  %v479_v18 = vld [vmem:[#allocation9 + $0x140] sm:$0xff]  ;;  %v500_v42 = vld [vmem:[#allocation9 + $0x1e8] sm:$0xff]  ;;  %v857_v37 = vld [vmem:[#allocation10 + $0x130] sm:$0xff] }
 0x189   :  { %1282 = vmatprep.subr.bf16.mxu0 %v1281_v54  ;;  %1314 = vmatprep.subr.bf16.mxu1 %v1313_v55  ;;  %v1295_v34 = vpack.c.bf16 %v483_v25, %v479_v18  ;;  %v1301_v53 = vpack.c.bf16 %v500_v42, %v496_v51  ;;  %v1333_v54 = vpack.c.bf16 %v502_v47, %v498_v43  ;;  %v499_v55 = vld [vmem:[#allocation9 + $0x1e0] sm:$0xff]  ;;  %v820_v0 = vld [vmem:[#allocation10 + $0x8] sm:$0xff]  ;;  %v882_v16 = vld [vmem:[#allocation10 + $0x1f8] sm:$0xff] }
 0x18a   :  { %338 = vmatmul.mubr.f32.gmra.mrb[4].mxu0 %v1786_v52  ;;  %427 = vmatmul.mubr.f32.gmra.mrb[4].mxu1 %v1786_v52  ;;  %v1303_v58 = vpack.c.bf16 %v499_v55, %v495_v50  ;;  %v1339_v2 = vpack.c.bf16 %v820_v0, %v819_v63  ;;  %v855_v25 = vld [vmem:[#allocation10 + $0x120] sm:$0xff]  ;;  %v844_v41 = vld [vmem:[#allocation10 + $0xc8] sm:$0xff]  ;;  %v861_v63 = vld [vmem:[#allocation10 + $0x150] sm:$0xff] }
 0x18b   :  { %1284 = vmatpush1.bf16.msra.mxu0 %v1283_v60  ;;  %1316 = vmatpush1.bf16.msra.mxu1 %v1315_v61  ;;  %v836_v60 = vld [vmem:[#allocation10 + $0x88] sm:$0xff]  ;;  %v867_v61 = vld [vmem:[#allocation10 + $0x180] sm:$0xff]  ;;  %v862_v0 = vld [vmem:[#allocation10 + $0x158] sm:$0xff] }
 0x18c   :  { %343 = vmatprep.mubr.f32.mxu0 %v1609_v46  ;;  %432 = vmatprep.mubr.f32.mxu1 %v1609_v46  ;;  %v1369_v1 = vpack.c.bf16 %v868_v62, %v867_v61  ;;  %v843_v40 = vld [vmem:[#allocation10 + $0xc0] sm:$0xff]  ;;  %v876_v43 = vld [vmem:[#allocation10 + $0x1c8] sm:$0xff]  ;;  %v830_v61 = vld [vmem:[#allocation10 + $0x58] sm:$0xff] }
 0x18d   :  { %1286 = vmatprep.subr.bf16.mxu0 %v1285_v4  ;;  %1318 = vmatprep.subr.bf16.mxu1 %v1317_v5  ;;  %v852_v4 = vld [vmem:[#allocation10 + $0x108] sm:$0xff]  ;;  %v838_v5 = vld [vmem:[#allocation10 + $0x98] sm:$0xff]  ;;  %v875_v51 = vld [vmem:[#allocation10 + $0x1c0] sm:$0xff]  ;;  %v1353_v42 = vpack.c.bf16 %v844_v41, %v843_v40  ;;  %v241_v40 = vlaneseq }
 0x18e   :  { %344 = vmatmul.mubr.f32.gmra.mrb[6].mxu0 %v1794_v13  ;;  %433 = vmatmul.mubr.f32.gmra.mrb[6].mxu1 %v1794_v13  ;;  %v827_v47 = vld [vmem:[#allocation10 + $0x40] sm:$0xff]  ;;  %v832_v6 = vld [vmem:[#allocation10 + $0x68] sm:$0xff]  ;;  %v833_v17 = vld [vmem:[#allocation10 + $0x70] sm:$0xff] }
 0x18f   :  { %1288 = vmatpush1.bf16.msra.mxu0 %v1287_v9  ;;  %1320 = vmatpush1.bf16.msra.mxu1 %v1319_v10  ;;  %v821_v9 = vld [vmem:[#allocation10 + $0x10] sm:$0xff]  ;;  %v822_v10 = vld [vmem:[#allocation10 + $0x18] sm:$0xff]  ;;  %v1846_v41 = vshrl.u32 %v241_v40, 7 }
 0x190   :  { %1290 = vmatprep.subr.bf16.mxu0 %v1289_v14  ;;  %1322 = vmatprep.subr.bf16.mxu1 %v1321_v15  ;;  %v1343_v12 = vpack.c.bf16 %v822_v10, %v821_v9  ;;  %v854_v14 = vld [vmem:[#allocation10 + $0x118] sm:$0xff]  ;;  %v863_v9 = vld [vmem:[#allocation10 + $0x160] sm:$0xff]  ;;  %v864_v10 = vld [vmem:[#allocation10 + $0x168] sm:$0xff] }
 0x191   :  { %589 = vmatprep.mubr.f32.mxu0 %v1609_v46  ;;  %678 = vmatprep.mubr.f32.mxu1 %v1609_v46 }
 0x193   :  { %1292 = vmatpush1.bf16.msra.mxu0 %v1291_v23  ;;  %1324 = vmatpush1.bf16.msra.mxu1 %v1323_v24  ;;  %v824_v23 = vld [vmem:[#allocation10 + $0x28] sm:$0xff]  ;;  %v1377_v24 = vpack.c.bf16 %v872_v21, %v871_v19  ;;  %v834_v19 = vld [vmem:[#allocation10 + $0x78] sm:$0xff] }
 0x194   :  { %1294 = vmatprep.subr.bf16.mxu0 %v1293_v26  ;;  %1326 = vmatprep.subr.bf16.mxu1 %v1325_v27  ;;  %v1347_v18 = vpack.c.bf16 %v824_v23, %v823_v22  ;;  %v856_v26 = vld [vmem:[#allocation10 + $0x128] sm:$0xff]  ;;  %v1367_v21 = vpack.c.bf16 %v834_v19, %v833_v17  ;;  %v865_v22 = vld [vmem:[#allocation10 + $0x170] sm:$0xff]  ;;  %v866_v23 = vld [vmem:[#allocation10 + $0x178] sm:$0xff] }
 0x195   :  { %v1379_v27 = vpack.c.bf16 %v856_v26, %v855_v25 }
 0x197   :  { %1296 = vmatpush1.bf16.msra.mxu0 %v1295_v34  ;;  %1328 = vmatpush1.bf16.msra.mxu1 %v1327_v35  ;;  %v826_v34 = vld [vmem:[#allocation10 + $0x38] sm:$0xff]  ;;  %v1381_v35 = vpack.c.bf16 %v874_v32, %v873_v30 }
 0x198   :  { %1298 = vmatprep.subr.bf16.mxu0 %v1297_v38  ;;  %1330 = vmatprep.subr.bf16.mxu1 %v1329_v39  ;;  %v1351_v36 = vpack.c.bf16 %v826_v34, %v825_v33  ;;  %v858_v38 = vld [vmem:[#allocation10 + $0x138] sm:$0xff] }
 0x199   :  { %v1383_v39 = vpack.c.bf16 %v858_v38, %v857_v37 }
 0x19b   :  { %1300 = vmatpush1.bf16.msra.mxu0 %v1299_v48  ;;  %1332 = vmatpush1.bf16.msra.mxu1 %v1331_v49  ;;  %v828_v48 = vld [vmem:[#allocation10 + $0x48] sm:$0xff]  ;;  %v1385_v49 = vpack.c.bf16 %v876_v43, %v875_v51  ;;  %v503_v51 = vld [vmem:[%s1956_s6] sm:$0xf]  ;;  %v251_v43 = vsub.s32 2, %v1846_v41 }
 0x19c   :  { %1302 = vmatprep.subr.bf16.mxu0 %v1301_v53  ;;  %1334 = vmatprep.subr.bf16.mxu1 %v1333_v54  ;;  %v1355_v50 = vpack.c.bf16 %v828_v48, %v827_v47  ;;  %v859_v53 = vld [vmem:[#allocation10 + $0x140] sm:$0xff]  ;;  %v860_v54 = vld [vmem:[#allocation10 + $0x148] sm:$0xff]  ;;  %v247_v47 = vsub.s32 1, %v1846_v41  ;;  %v255_v48 = vsub.s32 3, %v1846_v41 }
 0x19d   :  { %v1387_v55 = vpack.c.bf16 %v860_v54, %v859_v53 }
 0x19e   :  { %v1863_v53 = vrot.slane %v503_v51, %v247_v47  ;;  %v1867_v54 = vrot.slane %v503_v51, %v255_v48 }
 0x19f   :  { %1304 = vmatpush1.bf16.msra.mxu0 %v1303_v58  ;;  %1336 = vmatpush1.bf16.msra.mxu1 %v1335_v59  ;;  %v877_v58 = vld [vmem:[#allocation10 + $0x1d0] sm:$0xff]  ;;  %v1357_v59 = vpack.c.bf16 %v846_v57, %v845_v56 }
 0x1a0   :  { %1370 = vmatprep.subr.bf16.mxu1 %v1369_v1  ;;  %v1391_v1 = vpack.c.bf16 %v862_v0, %v861_v63 }
 0x1a2   :  { %590 = vmatmul.mubr.f32.vlgmr.msra.gmra.mrb[8].mxu0 %v1767_v44  ;;  %679 = vmatmul.mubr.f32.vlgmr.msra.gmra.mrb[8].mxu1 %v1767_v44  ;;  %v835_v44 = vld [vmem:[#allocation10 + $0x80] sm:$0xff] }
 0x1a3   :  { %595 = vmatprep.mubr.f32.mxu0 %v1609_v46  ;;  %684 = vmatprep.mubr.f32.mxu1 %v1609_v46 }
 0x1a6   :  { %596 = vmatmul.mubr.f32.gmra.mrb[10].mxu0 %v1777_v45  ;;  %685 = vmatmul.mubr.f32.gmra.mrb[10].mxu1 %v1777_v45  ;;  %v1337_v45 = vpack.c.bf16 %v836_v60, %v835_v44  ;;  %v878_v44 = vld [vmem:[#allocation10 + $0x1d8] sm:$0xff]  ;;  %v829_v60 = vld [vmem:[#allocation10 + $0x50] sm:$0xff] }
 0x1a7   :  { %601 = vmatprep.mubr.f32.mxu0 %v1609_v46  ;;  %690 = vmatprep.mubr.f32.mxu1 %v1609_v46  ;;  %v1359_v62 = vpack.c.bf16 %v830_v61, %v829_v60 }
 0x1a8   :  { %1338 = vmatprep.subr.bf16.mxu0 %v1337_v45  ;;  %v1389_v45 = vpack.c.bf16 %v878_v44, %v877_v58 }
 0x1a9   :  { %1340 = vmatpush3.bf16.msra.mxu0 %v1339_v2  ;;  %v847_v2 = vld [vmem:[#allocation10 + $0xe0] sm:$0xff] }
 0x1aa   :  { %602 = vmatmul.mubr.f32.gmra.mrb[12].mxu0 %v1786_v52  ;;  %691 = vmatmul.mubr.f32.gmra.mrb[12].mxu1 %v1786_v52  ;;  %v1371_v52 = vpack.c.bf16 %v852_v4, %v851_v3  ;;  %v848_v3 = vld [vmem:[#allocation10 + $0xe8] sm:$0xff]  ;;  %v879_v4 = vld [vmem:[#allocation10 + $0x1e0] sm:$0xff] }
 0x1ab   :  { %607 = vmatprep.mubr.f32.mxu0 %v1609_v46  ;;  %696 = vmatprep.mubr.f32.mxu1 %v1609_v46  ;;  %v837_v46 = vld [vmem:[#allocation10 + $0x90] sm:$0xff] }
 0x1ac   :  { %1372 = vmatpush3.bf16.msra.mxu1 %v1371_v52  ;;  %v1341_v7 = vpack.c.bf16 %v838_v5, %v837_v46  ;;  %v1361_v52 = vpack.c.bf16 %v848_v3, %v847_v2  ;;  %v880_v46 = vld [vmem:[#allocation10 + $0x1e8] sm:$0xff]  ;;  %v831_v5 = vld [vmem:[#allocation10 + $0x60] sm:$0xff] }
 0x1ad   :  { %1374 = vmatprep.subr.bf16.mxu1 %v1373_v11  ;;  %v1363_v8 = vpack.c.bf16 %v832_v6, %v831_v5  ;;  %v1395_v11 = vpack.c.bf16 %v864_v10, %v863_v9 }
 0x1ae   :  { %608 = vmatmul.mubr.f32.gmra.mrb[14].mxu0 %v1794_v13  ;;  %697 = vmatmul.mubr.f32.gmra.mrb[14].mxu1 %v1794_v13  ;;  %v853_v13 = vld [vmem:[#allocation10 + $0x110] sm:$0xff] }
 0x1af   :  { %1342 = vmatprep.subr.bf16.mxu0 %v1341_v7  ;;  %v1375_v15 = vpack.c.bf16 %v854_v14, %v853_v13  ;;  %v1393_v7 = vpack.c.bf16 %v880_v46, %v879_v4  ;;  %v850_v13 = vld [vmem:[#allocation10 + $0xf8] sm:$0xff]  ;;  %v881_v14 = vld [vmem:[#allocation10 + $0x1f0] sm:$0xff] }
 0x1b0   :  { %1344 = vmatpush3.bf16.msra.mxu0 %v1343_v12  ;;  %v849_v12 = vld [vmem:[#allocation10 + $0xf0] sm:$0xff] }
 0x1b1   :  { %1376 = vmatpush3.bf16.msra.mxu1 %v1375_v15  ;;  %1346 = vmatprep.subr.bf16.mxu0 %v1345_v20  ;;  %v1365_v15 = vpack.c.bf16 %v850_v13, %v849_v12  ;;  %v1397_v20 = vpack.c.bf16 %v882_v16, %v881_v14 }
 0x1b2   :  { %1378 = vmatprep.subr.bf16.mxu1 %v1377_v24  ;;  %v1399_v24 = vpack.c.bf16 %v866_v23, %v865_v22 }
 0x1b4   :  { %1348 = vmatpush3.bf16.msra.mxu0 %v1347_v18 }
 0x1b5   :  { %1380 = vmatpush3.bf16.msra.mxu1 %v1379_v27  ;;  %1350 = vmatprep.subr.bf16.mxu0 %v1349_v31 }
 0x1b6   :  { %1382 = vmatprep.subr.bf16.mxu1 %v1381_v35 }
 0x1b8   :  { %1352 = vmatpush3.bf16.msra.mxu0 %v1351_v36 }
 0x1b9   :  { %1384 = vmatpush3.bf16.msra.mxu1 %v1383_v39  ;;  %1354 = vmatprep.subr.bf16.mxu0 %v1353_v42  ;;  %v243_v42 = vsub.s32 0, %v1846_v41 }
 0x1ba   :  { %1386 = vmatprep.subr.bf16.mxu1 %v1385_v49 }
 0x1bb   :  { %v508_v49 = vrot.slane %v503_v51, %v243_v42 }
 0x1bc   :  { %1356 = vmatpush3.bf16.msra.mxu0 %v1355_v50  ;;  %v1859_v50 = vrot.slane %v503_v51, %v251_v43 }
 0x1bd   :  { %1388 = vmatpush3.bf16.msra.mxu1 %v1387_v55  ;;  %1358 = vmatprep.subr.bf16.mxu0 %v1357_v59 }
 0x1be   :  { %1390 = vmatprep.subr.bf16.mxu1 %v1389_v45 }
 0x1c0   :  { %1360 = vmatpush3.bf16.msra.mxu0 %v1359_v62 }
 0x1c1   :  { %1392 = vmatpush3.bf16.msra.mxu1 %v1391_v1  ;;  %1362 = vmatprep.subr.bf16.mxu0 %v1361_v52 }
 0x1c2   :  { %1394 = vmatprep.subr.bf16.mxu1 %v1393_v7 }
 0x1c4   :  { %1364 = vmatpush3.bf16.msra.mxu0 %v1363_v8 }
 0x1c5   :  { %1396 = vmatpush3.bf16.msra.mxu1 %v1395_v11  ;;  %1366 = vmatprep.subr.bf16.mxu0 %v1365_v15 }
 0x1c6   :  { %1398 = vmatprep.subr.bf16.mxu1 %v1397_v20 }
 0x1c8   :  { %1368 = vmatpush3.bf16.msra.mxu0 %v1367_v21 }
 0x1c9   :  { %1400 = vmatpush3.bf16.msra.mxu1 %v1399_v24 }
 0x255   :  { %v1814_v18 = vpop.f32.mrb[0].mxu0  ;;  %v1816_v25 = vpop.f32.mrb[0].mxu1 }
 0x256   :  { %v1818_v26 = vpop.f32.mrb[1].mxu0  ;;  %v1820_v27 = vpop.f32.mrb[1].mxu1 }
 0x259   :  { %v1822_v28 = vpop.f32.mrb[2].mxu0  ;;  %v1824_v29 = vpop.f32.mrb[2].mxu1 }
 0x25a   :  { %v1826_v30 = vpop.f32.mrb[3].mxu0  ;;  %v1828_v31 = vpop.f32.mrb[3].mxu1 }
 0x25d   :  { %v1830_v32 = vpop.f32.mrb[4].mxu0  ;;  %v1832_v33 = vpop.f32.mrb[4].mxu1 }
 0x25e   :  { %v1834_v34 = vpop.f32.mrb[5].mxu0  ;;  %v1836_v35 = vpop.f32.mrb[5].mxu1 }
 0x261   :  { %v1838_v36 = vpop.f32.mrb[6].mxu0  ;;  %v1840_v37 = vpop.f32.mrb[6].mxu1 }
 0x262   :  { %v1842_v38 = vpop.f32.mrb[7].mxu0  ;;  %v1844_v39 = vpop.f32.mrb[7].mxu1 }
 0x275   :  { %v591_v55 = vpop.f32.mrb[8].mxu0  ;;  %v680_v56 = vpop.f32.mrb[8].mxu1 }
 0x276   :  { %v592_v57 = vadd.f32 %v591_v55, %v508_v49  ;;  %v681_v58 = vadd.f32 %v680_v56, %v1859_v50  ;;  %v593_v59 = vpop.f32.mrb[9].mxu0  ;;  %v682_v44 = vpop.f32.mrb[9].mxu1 }
 0x277   :  { %v594_v60 = vadd.f32 %v593_v59, %v1863_v53  ;;  %v683_v61 = vadd.f32 %v682_v44, %v1867_v54 }
 0x278   :  { %v1104_v45 = vmul.f32 -1.442695, %v592_v57  ;;  %v1106_v62 = vmul.f32 -1.442695, %v681_v58 }
 0x279   :  { %v1105_v63 = vmul.f32 -1.442695, %v594_v60  ;;  %v1107_v0 = vmul.f32 -1.442695, %v683_v61  ;;  %v597_v1 = vpop.f32.mrb[10].mxu0  ;;  %v686_v2 = vpop.f32.mrb[10].mxu1 }
 0x27a   :  { %1419 = vpow2.f32 %v1104_v45  ;;  %v598_v3 = vadd.f32 %v597_v1, %v508_v49  ;;  %v687_v4 = vadd.f32 %v686_v2, %v1859_v50  ;;  %v599_v52 = vpop.f32.mrb[11].mxu0  ;;  %v688_v46 = vpop.f32.mrb[11].mxu1 }
 0x27b   :  { %1421 = vpow2.f32 %v1106_v62  ;;  %v600_v5 = vadd.f32 %v599_v52, %v1863_v53  ;;  %v689_v6 = vadd.f32 %v688_v46, %v1867_v54 }
 0x27c   :  { %1423 = vpow2.f32 %v1105_v63  ;;  %v1108_v7 = vmul.f32 -1.442695, %v598_v3  ;;  %v1110_v8 = vmul.f32 -1.442695, %v687_v4 }
 0x27d   :  { %1425 = vpow2.f32 %v1107_v0  ;;  %v1109_v9 = vmul.f32 -1.442695, %v600_v5  ;;  %v1111_v10 = vmul.f32 -1.442695, %v689_v6  ;;  %v603_v11 = vpop.f32.mrb[12].mxu0  ;;  %v692_v12 = vpop.f32.mrb[12].mxu1 }
 0x27e   :  { %1427 = vpow2.f32 %v1108_v7  ;;  %v604_v13 = vadd.f32 %v603_v11, %v508_v49  ;;  %v693_v14 = vadd.f32 %v692_v12, %v1859_v50  ;;  %v605_v15 = vpop.f32.mrb[13].mxu0  ;;  %v694_v16 = vpop.f32.mrb[13].mxu1 }
 0x27f   :  { %1429 = vpow2.f32 %v1110_v8  ;;  %v606_v17 = vadd.f32 %v605_v15, %v1863_v53  ;;  %v695_v19 = vadd.f32 %v694_v16, %v1867_v54 }
 0x280   :  { %1431 = vpow2.f32 %v1109_v9  ;;  %v1112_v20 = vmul.f32 -1.442695, %v604_v13  ;;  %v1114_v21 = vmul.f32 -1.442695, %v693_v14 }
 0x281   :  { %1433 = vpow2.f32 %v1111_v10  ;;  %v1113_v22 = vmul.f32 -1.442695, %v606_v17  ;;  %v1115_v23 = vmul.f32 -1.442695, %v695_v19  ;;  %v609_v24 = vpop.f32.mrb[14].mxu0  ;;  %v698_v40 = vpop.f32.mrb[14].mxu1 }
 0x282   :  { %1435 = vpow2.f32 %v1112_v20  ;;  %v610_v51 = vadd.f32 %v609_v24, %v508_v49  ;;  %v611_v55 = vpop.f32.mrb[15].mxu0  ;;  %v700_v56 = vpop.f32.mrb[15].mxu1  ;;  %v239_v49 = vld [vmem:[%s1954_s4] sm:$0xf]  ;;  %v699_v8 = vadd.f32 %v698_v40, %v1859_v50 }
 0x283   :  { %1437 = vpow2.f32 %v1114_v21  ;;  %v1883_v6 = vrot.slane %v239_v49, %v243_v42  ;;  %v1888_v10 = vrot.slane %v239_v49, %v251_v43  ;;  %v612_v12 = vadd.f32 %v611_v55, %v1863_v53 }
 0x284   :  { %v1420_v57 = vpop.eup %1419  ;;  %1439 = vpow2.f32 %v1113_v22  ;;  %v1116_v58 = vmul.f32 -1.442695, %v610_v51  ;;  %v1893_v14 = vrot.slane %v239_v49, %v247_v47  ;;  %v701_v15 = vadd.f32 %v700_v56, %v1867_v54 }
 0x285   :  { %v1422_v59 = vpop.eup %1421  ;;  %v751_v44 = vadd.f32 1.0, %v1420_v57  ;;  %1441 = vpow2.f32 %v1115_v23  ;;  %v1898_v50 = vrot.slane %v239_v49, %v255_v48  ;;  %v328_v53 = vadd.f32 %v1814_v18, %v1883_v6 }
 0x286   :  { %v1424_v60 = vpop.eup %1423  ;;  %v753_v61 = vadd.f32 1.0, %v1422_v59  ;;  %1443 = vpow2.f32 %v1116_v58  ;;  %v1118_v20 = vmul.f32 -1.442695, %v699_v8  ;;  %v417_v21 = vadd.f32 %v1816_v25, %v1888_v10 }
 0x287   :  { %v1426_v45 = vpop.eup %1425  ;;  %1445 = vrcp.f32 %v751_v44  ;;  %v752_v62 = vadd.f32 1.0, %v1424_v60  ;;  %v1117_v22 = vmul.f32 -1.442695, %v612_v12  ;;  %v330_v41 = vadd.f32 %v1818_v26, %v1893_v14 }
 0x288   :  { %v1428_v63 = vpop.eup %1427  ;;  %1447 = vrcp.f32 %v753_v61  ;;  %v754_v0 = vadd.f32 1.0, %v1426_v45  ;;  %v1119_v48 = vmul.f32 -1.442695, %v701_v15  ;;  %v419_v18 = vadd.f32 %v1820_v27, %v1898_v50 }
 0x289   :  { %v1430_v1 = vpop.eup %1429  ;;  %1449 = vrcp.f32 %v752_v62  ;;  %v755_v2 = vadd.f32 1.0, %v1428_v63  ;;  %v334_v25 = vadd.f32 %v1822_v28, %v1883_v6  ;;  %v423_v58 = vadd.f32 %v1824_v29, %v1888_v10 }
 0x28a   :  { %v1432_v3 = vpop.eup %1431  ;;  %1451 = vrcp.f32 %v754_v0  ;;  %v757_v4 = vadd.f32 1.0, %v1430_v1  ;;  %v336_v44 = vadd.f32 %v1826_v30, %v1893_v14  ;;  %v425_v61 = vadd.f32 %v1828_v31, %v1898_v50 }
 0x28b   :  { %v1434_v52 = vpop.eup %1433  ;;  %1453 = vrcp.f32 %v755_v2  ;;  %v756_v46 = vadd.f32 1.0, %v1432_v3  ;;  %v340_v29 = vadd.f32 %v1830_v32, %v1883_v6  ;;  %v429_v30 = vadd.f32 %v1832_v33, %v1888_v10 }
 0x28c   :  { %v1436_v5 = vpop.eup %1435  ;;  %1455 = vrcp.f32 %v757_v4  ;;  %v758_v7 = vadd.f32 1.0, %v1434_v52  ;;  %v342_v49 = vadd.f32 %v1834_v34, %v1893_v14  ;;  %v431_v3 = vadd.f32 %v1836_v35, %v1898_v50 }
 0x28d   :  { %v1438_v9 = vpop.eup %1437  ;;  %1457 = vrcp.f32 %v756_v46  ;;  %v759_v11 = vadd.f32 1.0, %v1436_v5  ;;  %v346_v52 = vadd.f32 %v1838_v36, %v1883_v6  ;;  %v435_v36 = vadd.f32 %v1840_v37, %v1888_v10 }
 0x28e   :  { %v1440_v13 = vpop.eup %1439  ;;  %1459 = vrcp.f32 %v758_v7  ;;  %v761_v42 = vadd.f32 1.0, %v1438_v9  ;;  %v437_v15 = vadd.f32 %v1844_v39, %v1898_v50 }
 0x28f   :  { %v1442_v16 = vpop.eup %1441  ;;  %1461 = vrcp.f32 %v759_v11  ;;  %v760_v43 = vadd.f32 1.0, %v1440_v13  ;;  %v348_v13 = vadd.f32 %v1842_v38, %v1893_v14  ;;  %v1120_v38 = vld [vmem:[%s1958_s8] ss:$0 sm:$0xff]  ;;  %s1610_s8 = smov [#allocation12]  }
 0x290   :  { %v1444_v17 = vpop.eup %1443  ;;  %1463 = vrcp.f32 %v761_v42  ;;  %v762_v19 = vadd.f32 1.0, %v1442_v16  ;;  %s1088_s25 = sshll.u32 %s1610_s8, 4  ;;  %s1089_s25 = int_to_ptr.vmem [resolvable:$true] %s1088_s25 }
 0x291   :  { %v1446_v47 = vpop.eup %1445  ;;  %1465 = vrcp.f32 %v760_v43  ;;  %v763_v54 = vadd.f32 1.0, %v1444_v17  ;;  %s1571_s26 = scalar_lea.vmem %s1089_s25, 512  ;;  %p1576_p5 = scmp.lt.s32.totalorder %s1089_s25, %s1089_s25 }
 0x292   :  { %v1448_v23 = vpop.eup %1447  ;;  %1467 = vrcp.f32 %v762_v19  ;;  %v799_v24 = vmul.f32 %v1446_v47, %v328_v53  ;;  %p1572_p4 = scmp.ne.s32.totalorder %s1089_s25, %s1571_s26  ;;  %p1577_p6 = scmp.lt.s32.totalorder %s1571_s26, %s1571_s26 }
 0x293   :  { %v1450_v40 = vpop.eup %1449  ;;  %1469 = vrcp.f32 %v763_v54  ;;  %v801_v51 = vmul.f32 %v1448_v23, %v417_v21 }
 0x294   :  { %v1452_v55 = vpop.eup %1451  ;;  %1471 = vpow2.f32 %v1118_v20  ;;  %v800_v56 = vmul.f32 %v1450_v40, %v330_v41  ;;  %p1578_p7 = por %p1577_p6, %p1576_p5 }
 0x295   :  { %v1454_v57 = vpop.eup %1453  ;;  %1473 = vpow2.f32 %v1117_v22  ;;  %v802_v26 = vmul.f32 %v1452_v55, %v419_v18 }
 0x296   :  { %v1456_v59 = vpop.eup %1455  ;;  %1475 = vpow2.f32 %v1119_v48  ;;  %947 = vmatprep.mubr.f32.mxu0 %v800_v56  ;;  %v803_v27 = vmul.f32 %v1454_v57, %v334_v25  ;;  %p1579_p8 = pnand %p1578_p7, %p1572_p4 }
 0x297   :  { %v1458_v60 = vpop.eup %1457  ;;  %1032 = vmatprep.mubr.f32.mxu1 %v802_v26  ;;  %948 = vmatmul.mubr.f32.vlgmr.msra.gmra.mrb[16].mxu0 %v799_v24  ;;  %v805_v28 = vmul.f32 %v1456_v59, %v423_v58 }
 0x298   :  { %v1460_v45 = vpop.eup %1459  ;;  %1033 = vmatmul.mubr.f32.vlgmr.msra.gmra.mrb[16].mxu1 %v801_v51  ;;  %v804_v62 = vmul.f32 %v1458_v60, %v336_v44 }
 0x299   :  { %v1462_v63 = vpop.eup %1461  ;;  %v806_v0 = vmul.f32 %v1460_v45, %v425_v61 }
 0x29a   :  { %v1464_v1 = vpop.eup %1463  ;;  %952 = vmatprep.mubr.f32.mxu0 %v804_v62  ;;  %v807_v31 = vmul.f32 %v1462_v63, %v340_v29 }
 0x29b   :  { %v1466_v2 = vpop.eup %1465  ;;  %1037 = vmatprep.mubr.f32.mxu1 %v806_v0  ;;  %953 = vmatmul.mubr.f32.gmra.mrb[18].mxu0 %v803_v27  ;;  %v809_v32 = vmul.f32 %v1464_v1, %v429_v30 }
 0x29c   :  { %v1468_v4 = vpop.eup %1467  ;;  %1038 = vmatmul.mubr.f32.gmra.mrb[18].mxu1 %v805_v28  ;;  %v808_v33 = vmul.f32 %v1466_v2, %v342_v49 }
 0x29d   :  { %v1470_v46 = vpop.eup %1469  ;;  %v810_v5 = vmul.f32 %v1468_v4, %v431_v3 }
 0x29e   :  { %v1472_v7 = vpop.eup %1471  ;;  %957 = vmatprep.mubr.f32.mxu0 %v808_v33  ;;  %v811_v34 = vmul.f32 %v1470_v46, %v346_v52 }
 0x29f   :  { %v1474_v8 = vpop.eup %1473  ;;  %v765_v9 = vadd.f32 1.0, %v1472_v7  ;;  %1042 = vmatprep.mubr.f32.mxu1 %v810_v5  ;;  %958 = vmatmul.mubr.f32.gmra.mrb[20].mxu0 %v807_v31 }
 0x2a0   :  { %v1476_v11 = vpop.eup %1475  ;;  %v764_v35 = vadd.f32 1.0, %v1474_v8  ;;  %1043 = vmatmul.mubr.f32.gmra.mrb[20].mxu1 %v809_v32 }
 0x2a1   :  { %1477 = vrcp.f32 %v765_v9  ;;  %v766_v12 = vadd.f32 1.0, %v1476_v11 }
 0x2a2   :  { %1479 = vrcp.f32 %v764_v35 }
 0x2a3   :  { %1481 = vrcp.f32 %v766_v12 }
 0x2ab   :  { %v1478_v6 = vpop.eup %1477 }
 0x2ac   :  { %v1480_v42 = vpop.eup %1479  ;;  %v813_v16 = vmul.f32 %v1478_v6, %v435_v36 }
 0x2ad   :  { %v1482_v43 = vpop.eup %1481  ;;  %v812_v17 = vmul.f32 %v1480_v42, %v348_v13 }
 0x2ae   :  { %v814_v53 = vmul.f32 %v1482_v43, %v437_v15 }
 0x2af   :  { %962 = vmatprep.mubr.f32.mxu0 %v812_v17 }
 0x2b0   :  { %1047 = vmatprep.mubr.f32.mxu1 %v814_v53  ;;  %963 = vmatmul.mubr.f32.gmra.mrb[22].mxu0 %v811_v34 }
 0x2b1   :  { %1048 = vmatmul.mubr.f32.gmra.mrb[22].mxu1 %v813_v16 }
 0x36a   :  { %v1153_v19 = vpop.f32.mrb[16].mxu0 }
 0x36b   :  { %v1197_v20 = vpop.f32.mrb[16].mxu1  ;;  %v1154_v47 = vpop.f32.mrb[17].mxu0 }
 0x36c   :  { %v1155_v37 = vadd.f32 %v1154_v47, %v1153_v19  ;;  %v1198_v10 = vpop.f32.mrb[17].mxu1 }
 0x36d   :  { %v1199_v21 = vadd.f32 %v1198_v10, %v1197_v20 }
 0x36e   :  { %v1156_v14 = vpop.f32.mrb[18].mxu0 }
 0x36f   :  { %v1035_v39 = vadd.f32 %v1199_v21, %v1155_v37  ;;  %v1200_v50 = vpop.f32.mrb[18].mxu1  ;;  %v1157_v54 = vpop.f32.mrb[19].mxu0 }
 0x370   :  { %v1158_v22 = vadd.f32 %v1157_v54, %v1156_v14  ;;  %v1201_v23 = vpop.f32.mrb[19].mxu1 }
 0x371   :  { %v1075_v41 = vadd.f32 %v1120_v38, %v1035_v39  ;;  %v1202_v48 = vadd.f32 %v1201_v23, %v1200_v50 }
 0x372   :  { %v1159_v24 = vpop.f32.mrb[20].mxu0 }
 0x373   :  { %1079 = vst [vmem:[#allocation12] sm:$0xff] %v1075_v41  ;;  %v1040_v40 = vadd.f32 %v1202_v48, %v1158_v22  ;;  %v1203_v18 = vpop.f32.mrb[20].mxu1  ;;  %v1160_v51 = vpop.f32.mrb[21].mxu0 }
 0x374   :  { %v1161_v55 = vadd.f32 %v1160_v51, %v1159_v24  ;;  %v1204_v25 = vpop.f32.mrb[21].mxu1 }
 0x375   :  { %v1076_v56 = vadd.f32 %v1120_v38, %v1040_v40  ;;  %v1205_v57 = vadd.f32 %v1204_v25, %v1203_v18 }
 0x377   :  { %1080 = vst [vmem:[#allocation12 + $0x8] sm:$0xff] %v1076_v56  ;;  %v1045_v58 = vadd.f32 %v1205_v57, %v1161_v55 }
 0x379   :  { %v1077_v26 = vadd.f32 %v1120_v38, %v1045_v58 }
 0x37b   :  { %1081 = vst [vmem:[#allocation12 + $0x10] sm:$0xff] %v1077_v26 }
 0x383   :  { %v1162_v59 = vpop.f32.mrb[22].mxu0 }
 0x384   :  { %v1206_v44 = vpop.f32.mrb[22].mxu1  ;;  %v1163_v27 = vpop.f32.mrb[23].mxu0 }
 0x385   :  { %v1164_v60 = vadd.f32 %v1163_v27, %v1162_v59  ;;  %v1207_v61 = vpop.f32.mrb[23].mxu1 }
 0x386   :  { %v1208_v28 = vadd.f32 %v1207_v61, %v1206_v44 }
 0x388   :  { %v1050_v45 = vadd.f32 %v1208_v28, %v1164_v60 }
 0x38a   :  { %v1078_v29 = vadd.f32 %v1120_v38, %v1050_v45 }
 0x38c   :  { %1082 = vst [vmem:[#allocation12 + $0x18] sm:$0xff] %v1078_v29 }
 0x38d   :  { %1582 = shalt.err (!%p1579_p8)
}
 0x38e   :  { %s1583_s0 = scalar_lea.hbm %s1959_s9, 512 }
 0x38f   :  { %p1584_p9 = scmp.ne.s32.totalorder %s1959_s9, %s1583_s0  ;;  %p1587_p10 = scmp.lt.u32.totalorder %s1583_s0, %s1959_s9 }
 0x391   :  { %p1589_p11 = pnand %p1587_p10, %p1584_p9 }
 0x393   :  { %1592 = shalt.err (!%p1589_p11)
}
 0x394   :  { %1094 = dma.vmem_to_hbm [thread:$0]  %s1089_s25, 512, %s1959_s9, [#allocation6], %s1605_s3, %s1605_s3, %s1606_s10  }
 0x395   :  { %1599 = dma.done.wait [#allocation6], 512  }
 0x396   :  { %1600 = vsyncadd [#allocation6], 4294966784 }
 0x397   :  { %1098 = vsyncpa [#allocation5], 1 }
 0x398   :  { %1099 = vsyncpa [#allocation8], 1 }
 0x399   :  { %1100 = vsyncpa [#allocation11], 1 }
 0x39a   :  { %1101 = vsyncpa [#allocation6], 1 }

</bundles_post_ra>
